<compile_context>
chip_gen: v5e
topology: v5e:2x2
jax: 0.10.0
libtpu: 0.0.40
codegen_flags: <defaults>
</compile_context>

<pallas_src>
import functools

import jax
import jax.numpy as jnp
from jax.experimental import pallas as pl
from jax.experimental.pallas import tpu as pltpu

_LANE = 128      # lane width     -> last-dim alignment (lane-dense, unmasked vst)
_SUBLANE = 8     # sublane width  -> second-to-last-dim alignment
# Conservative whole-array-block budget (v7x scoped default is 32 MiB of 64 MiB physical).
_VMEM_BUDGET_BYTES = 16 * 1024 * 1024


def _round_up(n: int, m: int) -> int:
    return ((n + m - 1) // m) * m


def _fused_mlp_kernel(x_ref, w_ref, b_ref, o_ref, *, n_layers: int, compute_dtype):
    """x_ref: (B_p, D_pad)       compute_dtype
       w_ref: (L, D_pad, D_pad)  compute_dtype  (stacked, zero-padded weights)
       b_ref: (L, 1, D_pad)      float32        (stacked, zero-padded biases)
       o_ref: (B_p, D_pad)       output dtype

    Static Python loop over layers (L is tiny); the running activation never leaves
    vregs/VMEM. Matmuls hit the MXU in compute_dtype with f32 accumulation; bias add
    + tanh (EUP slot, essentially free) run in f32.
    """
    h = x_ref[...]                                    # already compute_dtype
    for i in range(n_layers):                         # static i -> w_ref[i] is a free view
        acc = jnp.dot(h, w_ref[i], preferred_element_type=jnp.float32)
        acc = acc + b_ref[i]                          # (1, D_pad) broadcasts over rows
        if i < n_layers - 1:
            acc = jnp.tanh(acc)                       # act() after every layer but the last
            h = acc.astype(compute_dtype)
        else:
            h = acc
    o_ref[...] = h.astype(o_ref.dtype)


def prepare_params(params, compute_dtype=jnp.bfloat16):
    """One-time packing of PyTorch-style Linear params (runs OUTSIDE the hot path).

    params: list of (W:(in,out), b:(out,)).  Returns stacked, 128-padded,
    compute_dtype weights and f32 biases plus static metadata.
    Zero padding is exact through the network: padded weight rows/cols are 0,
    padded bias entries are 0, and tanh(0) = 0.
    """
    n_layers = len(params)
    dims = [params[0][0].shape[0]] + [w.shape[1] for (w, _) in params]
    d_pad = _round_up(max(dims), _LANE)

    w_stack = jnp.zeros((n_layers, d_pad, d_pad), compute_dtype)
    b_stack = jnp.zeros((n_layers, 1, d_pad), jnp.float32)
    for i, (w, b) in enumerate(params):
        w_stack = w_stack.at[i, : w.shape[0], : w.shape[1]].set(w.astype(compute_dtype))
        b_stack = b_stack.at[i, 0, : b.shape[0]].set(b.astype(jnp.float32))

    vmem_bytes = (w_stack.size * jnp.dtype(compute_dtype).itemsize
                  + b_stack.size * 4)
    assert vmem_bytes < _VMEM_BUDGET_BYTES, (
        f"stacked params ({vmem_bytes} B) exceed the whole-array VMEM budget; "
        "switch to a K/N-tiled grid for this size")

    return {
        "w": w_stack,
        "b": b_stack,
        "dims": tuple(int(d) for d in dims),
        "compute_dtype": compute_dtype,
    }


@functools.partial(jax.jit, static_argnames=("d_out", "compute_dtype"))
def _mlp_forward_jit(x, w_stack, b_stack, *, d_out, compute_dtype):
    B, D0 = x.shape
    n_layers, d_pad, _ = w_stack.shape
    B_p = _round_up(B, _SUBLANE)

    # Input pad + cast (fused by jit with neighbouring ops; padded rows are sliced off).
    x_p = jnp.pad(x, ((0, B_p - B), (0, d_pad - D0))).astype(compute_dtype)

    vmem = pl.BlockSpec(memory_space=pltpu.MemorySpace.VMEM)
    kernel = functools.partial(_fused_mlp_kernel,
                               n_layers=n_layers, compute_dtype=compute_dtype)

    out_p = pl.pallas_call(
        kernel,
        out_shape=jax.ShapeDtypeStruct((B_p, d_pad), x.dtype),
        in_specs=[vmem, vmem, vmem],
        out_specs=vmem,
    )(x_p, w_stack, b_stack)

    return out_p[:B, :d_out]


def mlp_forward(prepared, x):
    """Fused MLP forward on pre-padded / pre-cast / stacked params."""
    return _mlp_forward_jit(x, prepared["w"], prepared["b"],
                            d_out=prepared["dims"][-1],
                            compute_dtype=prepared["compute_dtype"])


def init_mlp_params(key, sizes, dtype=jnp.float32):
    """Deterministic init mimicking PyTorch nn.Linear defaults:
    U(-1/sqrt(fan_in), 1/sqrt(fan_in)) for both weight and bias.
    W stored as (in, out) == PyTorch weight (out, in) transposed."""
    params = []
    for i in range(len(sizes) - 1):
        fan_in, fan_out = sizes[i], sizes[i + 1]
        key, kw, kb = jax.random.split(key, 3)
        bound = 1.0 / (fan_in ** 0.5)
        w = jax.random.uniform(kw, (fan_in, fan_out), dtype, -bound, bound)
        b = jax.random.uniform(kb, (fan_out,), dtype, -bound, bound)
        params.append((w, b))
    return params


def mlp_reference(params, x):
    """Pure-JAX f32 reference for correctness check."""
    n_layers = len(params)
    h = x
    for i, (w, b) in enumerate(params):
        h = h @ w + b
        if i < n_layers - 1:
            h = jnp.tanh(h)
    return h


if __name__ == "__main__":
    key = jax.random.PRNGKey(0)
    sizes = [32, 64, 48, 16]   # MLP(sizes): Linear(32,64) Tanh Linear(64,48) Tanh Linear(48,16)
    batch = 8

    kx, kp = jax.random.split(key)
    x = jax.random.normal(kx, (batch, sizes[0]), dtype=jnp.float32)
    params = init_mlp_params(kp, sizes)

    ref = mlp_reference(params, x)

    # Strict check: fused kernel in full f32.
    prep_f32 = prepare_params(params, compute_dtype=jnp.float32)
    out_f32 = jax.block_until_ready(mlp_forward(prep_f32, x))
    assert out_f32.shape == (batch, sizes[-1])
    assert jnp.allclose(out_f32, ref, atol=1e-4, rtol=1e-4), "f32 mismatch vs reference"

    # Fast path: bf16 MXU operands, f32 accumulation + f32 bias/tanh epilogue.
    prep_bf16 = prepare_params(params, compute_dtype=jnp.bfloat16)
    out_bf16 = jax.block_until_ready(mlp_forward(prep_bf16, x))
    assert out_bf16.shape == (batch, sizes[-1])
    assert jnp.allclose(out_bf16, ref, atol=3e-2, rtol=3e-2), "bf16 mismatch vs reference"

    print("KERNEL_OK")
</pallas_src>

<mosaic_0001>
module attributes {stable_mosaic.version = 11 : i64} {
  func.func @_fused_mlp_kernel(%arg0: memref<8x128xf32, #tpu.memory_space<vmem>>, %arg1: memref<3x128x128xf32, #tpu.memory_space<vmem>>, %arg2: memref<3x1x128xf32, #tpu.memory_space<vmem>>, %arg3: memref<8x128xf32, #tpu.memory_space<vmem>>) attributes {dimension_semantics = [], scalar_prefetch = 0 : i64, scratch_operands = 0 : i64, tpu.core_type = #tpu.core_type<tc>} {
    %c0 = arith.constant 0 : index
    %c0_0 = arith.constant 0 : index
    %0 = vector.load %arg0[%c0, %c0_0] : memref<8x128xf32, #tpu.memory_space<vmem>>, vector<8x128xf32>
    %c0_1 = arith.constant 0 : index
    %c0_2 = arith.constant 0 : index
    %c0_3 = arith.constant 0 : index
    %1 = vector.load %arg1[%c0_1, %c0_2, %c0_3] : memref<3x128x128xf32, #tpu.memory_space<vmem>>, vector<1x128x128xf32>
    %2 = vector.shape_cast %1 : vector<1x128x128xf32> to vector<128x128xf32>
    %cst = arith.constant dense<0.000000e+00> : vector<8x128xf32>
    %3 = tpu.matmul %0, %2, %cst {dimension_numbers = #tpu.dot_dimension_numbers<[1], [0], [0], [1], [0, 0, 1, 1], [], []>} : vector<8x128xf32>, vector<128x128xf32>, vector<8x128xf32> -> vector<8x128xf32>
    %c0_4 = arith.constant 0 : index
    %c0_5 = arith.constant 0 : index
    %c0_6 = arith.constant 0 : index
    %4 = vector.load %arg2[%c0_4, %c0_5, %c0_6] : memref<3x1x128xf32, #tpu.memory_space<vmem>>, vector<1x1x128xf32>
    %5 = vector.shape_cast %4 : vector<1x1x128xf32> to vector<1x128xf32>
    %6 = vector.broadcast %5 : vector<1x128xf32> to vector<8x128xf32>
    %7 = arith.addf %3, %6 : vector<8x128xf32>
    %8 = math.tanh %7 : vector<8x128xf32>
    %c1 = arith.constant 1 : index
    %c0_7 = arith.constant 0 : index
    %c0_8 = arith.constant 0 : index
    %9 = vector.load %arg1[%c1, %c0_7, %c0_8] : memref<3x128x128xf32, #tpu.memory_space<vmem>>, vector<1x128x128xf32>
    %10 = vector.shape_cast %9 : vector<1x128x128xf32> to vector<128x128xf32>
    %cst_9 = arith.constant dense<0.000000e+00> : vector<8x128xf32>
    %11 = tpu.matmul %8, %10, %cst_9 {dimension_numbers = #tpu.dot_dimension_numbers<[1], [0], [0], [1], [0, 0, 1, 1], [], []>} : vector<8x128xf32>, vector<128x128xf32>, vector<8x128xf32> -> vector<8x128xf32>
    %c1_10 = arith.constant 1 : index
    %c0_11 = arith.constant 0 : index
    %c0_12 = arith.constant 0 : index
    %12 = vector.load %arg2[%c1_10, %c0_11, %c0_12] : memref<3x1x128xf32, #tpu.memory_space<vmem>>, vector<1x1x128xf32>
    %13 = vector.shape_cast %12 : vector<1x1x128xf32> to vector<1x128xf32>
    %14 = vector.broadcast %13 : vector<1x128xf32> to vector<8x128xf32>
    %15 = arith.addf %11, %14 : vector<8x128xf32>
    %16 = math.tanh %15 : vector<8x128xf32>
    %c2 = arith.constant 2 : index
    %c0_13 = arith.constant 0 : index
    %c0_14 = arith.constant 0 : index
    %17 = vector.load %arg1[%c2, %c0_13, %c0_14] : memref<3x128x128xf32, #tpu.memory_space<vmem>>, vector<1x128x128xf32>
    %18 = vector.shape_cast %17 : vector<1x128x128xf32> to vector<128x128xf32>
    %cst_15 = arith.constant dense<0.000000e+00> : vector<8x128xf32>
    %19 = tpu.matmul %16, %18, %cst_15 {dimension_numbers = #tpu.dot_dimension_numbers<[1], [0], [0], [1], [0, 0, 1, 1], [], []>} : vector<8x128xf32>, vector<128x128xf32>, vector<8x128xf32> -> vector<8x128xf32>
    %c2_16 = arith.constant 2 : index
    %c0_17 = arith.constant 0 : index
    %c0_18 = arith.constant 0 : index
    %20 = vector.load %arg2[%c2_16, %c0_17, %c0_18] : memref<3x1x128xf32, #tpu.memory_space<vmem>>, vector<1x1x128xf32>
    %21 = vector.shape_cast %20 : vector<1x1x128xf32> to vector<1x128xf32>
    %22 = vector.broadcast %21 : vector<1x128xf32> to vector<8x128xf32>
    %23 = arith.addf %19, %22 : vector<8x128xf32>
    %c0_19 = arith.constant 0 : index
    %c0_20 = arith.constant 0 : index
    %24 = vector.load %arg3[%c0_19, %c0_20] : memref<8x128xf32, #tpu.memory_space<vmem>>, vector<8x128xf32>
    tpu.vector_store %arg3[%c0_19, %c0_20], %23 {strides = array<i32>} : memref<8x128xf32, #tpu.memory_space<vmem>>, vector<8x128xf32>,
    return
  }
}

</mosaic_0001>

<bundles_post_ra>
// kernel: _mlp_forward_jit.1
= control target key start
LH: loop header
LB: loop body
LE: loop exit
PB: predicated region body
PF: predicated region fallthrough
CT: control target
= control target key end

     0   :  { %8 = vsyncpa [#allocation3], 0  ;;  %s283_s0 = inlined_call_operand.vmem [shape: f32[8,128], index: 0, kind: input, shape index: {}]   ;;  %s284_s1 = inlined_call_operand.hbm [shape: f32[3,128,128], index: 1, kind: input, shape index: {}]   ;;  %s285_s2 = inlined_call_operand.vmem [shape: f32[3,1,128], index: 2, kind: input, shape index: {}]   ;;  %s286_s3 = inlined_call_operand.hbm [shape: f32[8,128], index: 3, kind: output, shape index: {}]  }
   0x1   :  { %9 = vsyncpa [#allocation4], 0  ;;  %s16_s14 = sshll.u32 %s284_s1, 4  ;;  %s241_s15 = smov [#allocation2]   ;;  %s17_s14 = int_to_ptr.hbm [resolvable:$true] %s16_s14 }
   0x2   :  { %s18_s16 = sshll.u32 %s241_s15, 4  ;;  %s242_s17 = smov 128   ;;  %s19_s16 = int_to_ptr.vmem [resolvable:$true] %s18_s16 }
   0x3   :  { %s243_s18 = smov 8  }
   0x4   :  { %24 = dma.hbm_to_vmem [thread:$0]  %s17_s14, 6144, %s19_s16, [#allocation3], %s242_s17, %s242_s17, %s243_s18  }
   0x5   :  { %237 = dma.done.wait [#allocation3], 6144  }
   0x6   :  { %238 = vsyncadd [#allocation3], 4294961152  ;;  %v47_v0 = vld [vmem:[#allocation2 + $0x78] sm:$0xff]  ;;  %v46_v1 = vld [vmem:[#allocation2 + $0x70] sm:$0xff]  ;;  %s244_s25 = smov [#allocation5]   ;;  %s166_s29 = sshll.u32 %s286_s3, 4  ;;  %s167_s29 = int_to_ptr.hbm [resolvable:$true] %s166_s29 }
   0x7   :  { %52 = vmatpush.msra.mxu0 %v47_v0  ;;  %v45_v2 = vld [vmem:[#allocation2 + $0x68] sm:$0xff]  ;;  %v44_v3 = vld [vmem:[#allocation2 + $0x60] sm:$0xff]  ;;  %v89_v4 = vld [vmem:[#allocation2 + $0xf8] sm:$0xff]  ;;  %s164_s26 = sshll.u32 %s244_s25, 4  ;;  %s165_s26 = int_to_ptr.vmem [resolvable:$true] %s164_s26 }
   0x8   :  { %v43_v5 = vld [vmem:[#allocation2 + $0x58] sm:$0xff]  ;;  %95 = vmatpush.msra.mxu1 %v89_v4  ;;  %v88_v6 = vld [vmem:[#allocation2 + $0xf0] sm:$0xff]  ;;  %v87_v7 = vld [vmem:[#allocation2 + $0xe8] sm:$0xff] }
   0x9   :  { %53 = vmatpush.msra.mxu0 %v46_v1  ;;  %v42_v8 = vld [vmem:[#allocation2 + $0x50] sm:$0xff]  ;;  %v86_v9 = vld [vmem:[#allocation2 + $0xe0] sm:$0xff]  ;;  %v41_v10 = vld [vmem:[#allocation2 + $0x48] sm:$0xff] }
   0xa   :  { %96 = vmatpush.msra.mxu1 %v88_v6  ;;  %v85_v11 = vld [vmem:[#allocation2 + $0xd8] sm:$0xff]  ;;  %v40_v12 = vld [vmem:[#allocation2 + $0x40] sm:$0xff]  ;;  %v84_v13 = vld [vmem:[#allocation2 + $0xd0] sm:$0xff] }
   0xb   :  { %54 = vmatpush.msra.mxu0 %v45_v2  ;;  %v39_v14 = vld [vmem:[#allocation2 + $0x38] sm:$0xff]  ;;  %v83_v15 = vld [vmem:[#allocation2 + $0xc8] sm:$0xff]  ;;  %v38_v16 = vld [vmem:[#allocation2 + $0x30] sm:$0xff] }
   0xc   :  { %97 = vmatpush.msra.mxu1 %v87_v7  ;;  %v82_v17 = vld [vmem:[#allocation2 + $0xc0] sm:$0xff]  ;;  %v37_v18 = vld [vmem:[#allocation2 + $0x28] sm:$0xff]  ;;  %v81_v19 = vld [vmem:[#allocation2 + $0xb8] sm:$0xff] }
   0xd   :  { %55 = vmatpush.msra.mxu0 %v44_v3  ;;  %v36_v20 = vld [vmem:[#allocation2 + $0x20] sm:$0xff]  ;;  %v80_v21 = vld [vmem:[#allocation2 + $0xb0] sm:$0xff]  ;;  %v35_v22 = vld [vmem:[#allocation2 + $0x18] sm:$0xff] }
   0xe   :  { %98 = vmatpush.msra.mxu1 %v86_v9  ;;  %v79_v23 = vld [vmem:[#allocation2 + $0xa8] sm:$0xff]  ;;  %v34_v24 = vld [vmem:[#allocation2 + $0x10] sm:$0xff]  ;;  %v32_v26 = vld [vmem:[#allocation2] sm:$0xff] }
   0xf   :  { %56 = vmatpush.msra.mxu0 %v43_v5  ;;  %v33_v25 = vld [vmem:[#allocation2 + $0x8] sm:$0xff]  ;;  %v31_v27 = vld [vmem:[%s283_s0] sm:$0xff]  ;;  %v77_v29 = vld [vmem:[#allocation2 + $0x98] sm:$0xff] }
  0x10   :  { %99 = vmatpush.msra.mxu1 %v85_v11  ;;  %v78_v28 = vld [vmem:[#allocation2 + $0xa0] sm:$0xff]  ;;  %v76_v30 = vld [vmem:[#allocation2 + $0x90] sm:$0xff]  ;;  %v75_v31 = vld [vmem:[#allocation2 + $0x88] sm:$0xff] }
  0x11   :  { %57 = vmatpush.msra.mxu0 %v42_v8  ;;  %v74_v32 = vld [vmem:[#allocation2 + $0x80] sm:$0xff]  ;;  %v132_v33 = vld [vmem:[#allocation2 + $0x178] sm:$0xff]  ;;  %v131_v34 = vld [vmem:[#allocation2 + $0x170] sm:$0xff] }
  0x12   :  { %100 = vmatpush.msra.mxu1 %v84_v13  ;;  %138 = vmatpush.msra.mxu2 %v132_v33  ;;  %v130_v35 = vld [vmem:[#allocation2 + $0x168] sm:$0xff]  ;;  %v129_v36 = vld [vmem:[#allocation2 + $0x160] sm:$0xff]  ;;  %v128_v37 = vld [vmem:[#allocation2 + $0x158] sm:$0xff] }
  0x13   :  { %58 = vmatpush.msra.mxu0 %v41_v10  ;;  %v127_v38 = vld [vmem:[#allocation2 + $0x150] sm:$0xff]  ;;  %v126_v39 = vld [vmem:[#allocation2 + $0x148] sm:$0xff]  ;;  %v125_v40 = vld [vmem:[#allocation2 + $0x140] sm:$0xff] }
  0x14   :  { %101 = vmatpush.msra.mxu1 %v83_v15  ;;  %139 = vmatpush.msra.mxu2 %v131_v34  ;;  %v124_v41 = vld [vmem:[#allocation2 + $0x138] sm:$0xff]  ;;  %v123_v42 = vld [vmem:[#allocation2 + $0x130] sm:$0xff]  ;;  %v122_v43 = vld [vmem:[#allocation2 + $0x128] sm:$0xff] }
  0x15   :  { %59 = vmatpush.msra.mxu0 %v40_v12  ;;  %v182_v44 = vld [vmem:[%s285_s2] ss:$0 sm:$0xff]  ;;  %v120_v49 = vld [vmem:[#allocation2 + $0x118] sm:$0xff]  ;;  %v119_v50 = vld [vmem:[#allocation2 + $0x110] sm:$0xff] }
  0x16   :  { %102 = vmatpush.msra.mxu1 %v82_v17  ;;  %140 = vmatpush.msra.mxu2 %v130_v35  ;;  %v121_v48 = vld [vmem:[#allocation2 + $0x120] sm:$0xff]  ;;  %v118_v51 = vld [vmem:[#allocation2 + $0x108] sm:$0xff] }
  0x17   :  { %60 = vmatpush.msra.mxu0 %v39_v14  ;;  %v117_v52 = vld [vmem:[#allocation2 + $0x100] sm:$0xff] }
  0x18   :  { %103 = vmatpush.msra.mxu1 %v81_v19  ;;  %141 = vmatpush.msra.mxu2 %v129_v36  ;;  %v183_v53 = vld [vmem:[%s285_s2 + $0x1] ss:$0 sm:$0xff]  ;;  %v184_v57 = vld [vmem:[%s285_s2 + $0x2] ss:$0 sm:$0xff] }
  0x19   :  { %61 = vmatpush.msra.mxu0 %v38_v16 }
  0x1a   :  { %104 = vmatpush.msra.mxu1 %v80_v21  ;;  %142 = vmatpush.msra.mxu2 %v128_v37 }
  0x1b   :  { %62 = vmatpush.msra.mxu0 %v37_v18 }
  0x1c   :  { %105 = vmatpush.msra.mxu1 %v79_v23  ;;  %143 = vmatpush.msra.mxu2 %v127_v38 }
  0x1d   :  { %63 = vmatpush.msra.mxu0 %v36_v20 }
  0x1e   :  { %106 = vmatpush.msra.mxu1 %v78_v28  ;;  %144 = vmatpush.msra.mxu2 %v126_v39 }
  0x1f   :  { %64 = vmatpush.msra.mxu0 %v35_v22 }
  0x20   :  { %107 = vmatpush.msra.mxu1 %v77_v29  ;;  %145 = vmatpush.msra.mxu2 %v125_v40 }
  0x21   :  { %65 = vmatpush.msra.mxu0 %v34_v24 }
  0x22   :  { %108 = vmatpush.msra.mxu1 %v76_v30  ;;  %146 = vmatpush.msra.mxu2 %v124_v41 }
  0x23   :  { %66 = vmatpush.msra.mxu0 %v33_v25 }
  0x24   :  { %109 = vmatpush.msra.mxu1 %v75_v31  ;;  %147 = vmatpush.msra.mxu2 %v123_v42 }
  0x25   :  { %67 = vmatpush.msra.mxu0 %v32_v26 }
  0x26   :  { %68 = vmatmul.f32.vlgmr.msra.gmra.mxu0 %v31_v27  ;;  %110 = vmatpush.msra.mxu1 %v74_v32 }
  0x27   :  { %148 = vmatpush.msra.mxu2 %v122_v43 }
  0x29   :  { %149 = vmatpush.msra.mxu2 %v121_v48 }
  0x2b   :  { %150 = vmatpush.msra.mxu2 %v120_v49 }
  0x2d   :  { %151 = vmatpush.msra.mxu2 %v119_v50 }
  0x2f   :  { %152 = vmatpush.msra.mxu2 %v118_v51 }
  0x31   :  { %153 = vmatpush.msra.mxu2 %v117_v52 }
  0xa3   :  { %v69_v45 = vpop.f32.mrf.mxu0 }
  0xa4   :  { %v70_v46 = vadd.f32 %v182_v44, %v69_v45 }
  0xa6   :  { %185 = vtanh.f32 %v70_v46 }
  0xac   :  { %v186_v47 = vpop.eup %185 }
  0xad   :  { %111 = vmatmul.f32.vlgmr.msra.gmra.mxu1 %v186_v47 }
 0x12a   :  { %v112_v54 = vpop.f32.mrf.mxu1 }
 0x12b   :  { %v113_v55 = vadd.f32 %v183_v53, %v112_v54 }
 0x12d   :  { %187 = vtanh.f32 %v113_v55 }
 0x133   :  { %v188_v56 = vpop.eup %187 }
 0x134   :  { %154 = vmatmul.f32.vlgmr.msra.gmra.mxu2 %v188_v56 }
 0x1b7   :  { %v155_v58 = vpop.f32.mrf.mxu2 }
 0x1b8   :  { %v156_v59 = vadd.f32 %v184_v57, %v155_v58 }
 0x1ba   :  { %158 = vst [vmem:[#allocation5] sm:$0xff] %v156_v59 }
 0x1bb   :  { %169 = dma.vmem_to_hbm [thread:$0]  %s165_s26, 128, %s167_s29, [#allocation4]  }
 0x1bc   :  { %239 = dma.done.wait [#allocation4], 128  }
 0x1bd   :  { %240 = vsyncadd [#allocation4], 4294967168 }
 0x1be   :  { %174 = vsyncpa [#allocation3], 1 }
 0x1bf   :  { %175 = vsyncpa [#allocation4], 1 }

</bundles_post_ra>
